<compile_context>
chip_gen: v7x
topology: tpu7x:2x2x1
jax: 0.10.0
libtpu: 0.0.40
codegen_flags: <defaults>
</compile_context>

<pallas_src>
import math

import jax
import jax.numpy as jnp
from jax.experimental import pallas as pl
from jax.experimental.pallas import tpu as pltpu

# ----------------------------- hyper-params ---------------------------------
NUM_FLOWS = 4      # number of conditional affine coupling layers
FEAT = 8           # feature dim d (must be even)
COND = 4           # condition dim
HID = 16           # hidden dim of each coupling conditioner MLP
BATCH = 256        # batch size m (two lane-dense tiles of 128)

_HALF = FEAT // 2
_LOG_2PI = math.log(2.0 * math.pi)


# ------------------------------- kernel -------------------------------------
def _flow_kernel(x_ref, c_ref, w1_ref, b1_ref, wst_ref, bst_ref,
                 zs_ref, out_ref):
    """One batch tile of ConditionalNormalizingFlowModel.forward.

    Transposed (batch-on-lanes) layout.

    Inputs (VMEM refs):
      x_ref   : (FEAT, TM)               input samples (transposed)
      c_ref   : (COND, TM)               condition (transposed)
      w1_ref  : (K, HID, HALF+COND)      fused conditioner weight [w1x ; w1c]^T
      b1_ref  : (K, HID, 1)              conditioner bias
      wst_ref : (K, 2*HALF, HID)         fused [s ; t] head weight
      bst_ref : (K, 2*HALF, 1)           fused [s ; t] head bias
    Outputs (VMEM refs):
      zs_ref  : (K+1, FEAT, TM)          every intermediate z (transposed)
      out_ref : (2, TM)                  row 0 = prior log-prob, row 1 = log-det
    """
    x = x_ref[...]          # (FEAT, TM)
    cond = c_ref[...]       # (COND, TM)
    tm = x.shape[1]

    zs_ref[0] = x
    x1 = x[0:_HALF, :]      # (HALF, TM)  cheap sublane slices
    x2 = x[_HALF:FEAT, :]
    log_det = jnp.zeros((1, tm), jnp.float32)

    for k in range(NUM_FLOWS):
        # alternate which half conditions (xa) vs. is transformed (xb)
        if k % 2 == 0:
            xa, xb = x1, x2
        else:
            xa, xb = x2, x1

        # fused conditioner:  h = tanh(W1 @ [xa ; cond] + b1)
        inp = jnp.concatenate([xa, cond], axis=0)            # (HALF+COND, TM)
        h = jnp.tanh(
            jnp.dot(w1_ref[k], inp, preferred_element_type=jnp.float32)
            + b1_ref[k])                                      # (HID, TM)

        # fused s/t heads: one matmul, slice, tanh only the s half
        st = (jnp.dot(wst_ref[k], h, preferred_element_type=jnp.float32)
              + bst_ref[k])                                   # (2*HALF, TM)
        s = jnp.tanh(st[0:_HALF, :])
        t = st[_HALF:2 * _HALF, :]

        yb = xb * jnp.exp(s) + t
        if k % 2 == 0:
            x2 = yb
        else:
            x1 = yb

        log_det = log_det + jnp.sum(s, axis=0, keepdims=True)
        # single full-tile store of the recombined intermediate z
        zs_ref[k + 1] = jnp.concatenate([x1, x2], axis=0)

    # standard-Normal prior log-prob of zs[-1], summed over the feature dim
    sq = (jnp.sum(x1 * x1, axis=0, keepdims=True)
          + jnp.sum(x2 * x2, axis=0, keepdims=True))          # (1, TM)
    logp = -0.5 * sq - 0.5 * FEAT * _LOG_2PI
    out_ref[...] = jnp.concatenate([logp, log_det], axis=0)   # (2, TM)


# --------------------------- host-side packing -------------------------------
def _pack_params(params):
    """Stack + transpose the per-flow weights for the batch-on-lanes layout."""
    w1x, w1c, b1, ws, bs, wt, bt = params
    # (K, HALF+COND, HID) -> (K, HID, HALF+COND)
    w1 = jnp.swapaxes(jnp.concatenate([w1x, w1c], axis=1), 1, 2)
    b1t = jnp.swapaxes(b1, 1, 2)                               # (K, HID, 1)
    # (K, HID, 2*HALF) -> (K, 2*HALF, HID)   rows [0:HALF]=s head, [HALF:]=t head
    wst = jnp.swapaxes(jnp.concatenate([ws, wt], axis=2), 1, 2)
    bst = jnp.swapaxes(jnp.concatenate([bs, bt], axis=2), 1, 2)  # (K, 2*HALF, 1)
    return w1, b1t, wst, bst


# ------------------------------- wrapper -------------------------------------
def conditional_flow_forward(x, condition, params):
    """Mirrors ConditionalNormalizingFlowModel.forward(x, condition)."""
    m, d = x.shape
    assert d == FEAT
    assert condition.shape == (m, COND)
    w1, b1, wst, bst = _pack_params(params)

    xT = x.T            # (FEAT, m)   batch on lanes
    cT = condition.T    # (COND, m)

    # batch tile: lane-dense 128 when possible; keep small enough for v7x VMEM
    tm = 128 if m % 128 == 0 else m
    grid = (m // tm,)

    const3 = lambda i: (0, 0, 0)   # weights: resident across grid iterations
    call = pl.pallas_call(
        _flow_kernel,
        out_shape=(
            jax.ShapeDtypeStruct((NUM_FLOWS + 1, FEAT, m), jnp.float32),
            jax.ShapeDtypeStruct((2, m), jnp.float32),
        ),
        grid=grid,
        in_specs=[
            pl.BlockSpec((FEAT, tm), lambda i: (0, i)),
            pl.BlockSpec((COND, tm), lambda i: (0, i)),
            pl.BlockSpec(w1.shape, const3),
            pl.BlockSpec(b1.shape, const3),
            pl.BlockSpec(wst.shape, const3),
            pl.BlockSpec(bst.shape, const3),
        ],
        out_specs=(
            pl.BlockSpec((NUM_FLOWS + 1, FEAT, tm), lambda i: (0, 0, i)),
            pl.BlockSpec((2, tm), lambda i: (0, i)),
        ),
        compiler_params=pltpu.CompilerParams(
            dimension_semantics=("parallel",)),
    )
    zs_stack, out2 = call(xT, cT, w1, b1, wst, bst)
    zs = [zs_stack[i].T for i in range(NUM_FLOWS + 1)]   # back to (m, FEAT)
    return zs, out2[0], out2[1]


# ----------------------- pure-JAX reference (for checking) -------------------
def _reference_forward(x, cond, params):
    w1x, w1c, b1, ws, bs, wt, bt = params
    m = x.shape[0]
    zs = [x]
    log_det = jnp.zeros((m,), jnp.float32)
    for k in range(NUM_FLOWS):
        x1, x2 = x[:, :_HALF], x[:, _HALF:]
        xa, xb = (x1, x2) if k % 2 == 0 else (x2, x1)
        h = jnp.tanh(xa @ w1x[k] + cond @ w1c[k] + b1[k])
        s = jnp.tanh(h @ ws[k] + bs[k])
        t = h @ wt[k] + bt[k]
        yb = xb * jnp.exp(s) + t
        x = jnp.concatenate([x1, yb], 1) if k % 2 == 0 \
            else jnp.concatenate([yb, x2], 1)
        log_det = log_det + jnp.sum(s, axis=1)
        zs.append(x)
    logp = jnp.sum(-0.5 * x * x - 0.5 * _LOG_2PI, axis=1)
    return zs, logp, log_det


# ------------------------------ param init -----------------------------------
def _init_params(key):
    ks = jax.random.split(key, 7)
    scale = 0.3
    w1x = scale * jax.random.normal(ks[0], (NUM_FLOWS, _HALF, HID), jnp.float32)
    w1c = scale * jax.random.normal(ks[1], (NUM_FLOWS, COND, HID), jnp.float32)
    b1 = scale * jax.random.normal(ks[2], (NUM_FLOWS, 1, HID), jnp.float32)
    ws = scale * jax.random.normal(ks[3], (NUM_FLOWS, HID, _HALF), jnp.float32)
    bs = scale * jax.random.normal(ks[4], (NUM_FLOWS, 1, _HALF), jnp.float32)
    wt = scale * jax.random.normal(ks[5], (NUM_FLOWS, HID, _HALF), jnp.float32)
    bt = scale * jax.random.normal(ks[6], (NUM_FLOWS, 1, _HALF), jnp.float32)
    return (w1x, w1c, b1, ws, bs, wt, bt)


# --------------------------------- main ---------------------------------------
if __name__ == "__main__":
    root = jax.random.PRNGKey(0)
    k_x, k_c, k_p = jax.random.split(root, 3)

    x = jax.random.normal(k_x, (BATCH, FEAT), jnp.float32)
    condition = jax.random.normal(k_c, (BATCH, COND), jnp.float32)
    params = _init_params(k_p)

    zs, prior_logprob, log_det = conditional_flow_forward(x, condition, params)
    jax.block_until_ready((zs, prior_logprob, log_det))

    # sanity-check against a pure-JAX reference
    zs_ref, logp_ref, ld_ref = _reference_forward(x, condition, params)
    for a, b in zip(zs, zs_ref):
        assert jnp.allclose(a, b, atol=1e-5, rtol=1e-5)
    assert jnp.allclose(prior_logprob, logp_ref, atol=1e-5, rtol=1e-5)
    assert jnp.allclose(log_det, ld_ref, atol=1e-5, rtol=1e-5)

    # log_prob(x) = prior_logprob + log_det (as in the PyTorch module)
    _ = jax.block_until_ready(prior_logprob + log_det)

    print("KERNEL_OK")
</pallas_src>

<mosaic_0001>
module attributes {stable_mosaic.version = 11 : i64} {
  func.func @_flow_kernel(%arg0: i32, %arg1: memref<8x128xf32, #tpu.memory_space<vmem>>, %arg2: memref<4x128xf32, #tpu.memory_space<vmem>>, %arg3: memref<4x16x8xf32, #tpu.memory_space<vmem>>, %arg4: memref<4x16x1xf32, #tpu.memory_space<vmem>>, %arg5: memref<4x8x16xf32, #tpu.memory_space<vmem>>, %arg6: memref<4x8x1xf32, #tpu.memory_space<vmem>>, %arg7: memref<5x8x128xf32, #tpu.memory_space<vmem>>, %arg8: memref<2x128xf32, #tpu.memory_space<vmem>>) attributes {dimension_semantics = [#tpu.dimension_semantics<parallel>], iteration_bounds = array<i64: 2>, scalar_prefetch = 0 : i64, scratch_operands = 0 : i64, tpu.core_type = #tpu.core_type<tc>, window_params = [{transform_indices = @transform_0, window_bounds = array<i64: 8, 128>}, {transform_indices = @transform_1, window_bounds = array<i64: 4, 128>}, {pipeline_mode = #tpu.pipeline_mode<synchronous>, transform_indices = @transform_2, window_bounds = array<i64: 4, 16, 8>}, {pipeline_mode = #tpu.pipeline_mode<synchronous>, transform_indices = @transform_3, window_bounds = array<i64: 4, 16, 1>}, {pipeline_mode = #tpu.pipeline_mode<synchronous>, transform_indices = @transform_4, window_bounds = array<i64: 4, 8, 16>}, {pipeline_mode = #tpu.pipeline_mode<synchronous>, transform_indices = @transform_5, window_bounds = array<i64: 4, 8, 1>}, {transform_indices = @transform_6, window_bounds = array<i64: 5, 8, 128>}, {transform_indices = @transform_7, window_bounds = array<i64: 2, 128>}]} {
    %c0 = arith.constant 0 : index
    %c0_0 = arith.constant 0 : index
    %0 = vector.load %arg1[%c0, %c0_0] : memref<8x128xf32, #tpu.memory_space<vmem>>, vector<8x128xf32>
    %c0_1 = arith.constant 0 : index
    %c0_2 = arith.constant 0 : index
    %1 = vector.load %arg2[%c0_1, %c0_2] : memref<4x128xf32, #tpu.memory_space<vmem>>, vector<4x128xf32>
    %c0_3 = arith.constant 0 : index
    %c0_4 = arith.constant 0 : index
    %c0_5 = arith.constant 0 : index
    %2 = vector.load %arg7[%c0_3, %c0_4, %c0_5] : memref<5x8x128xf32, #tpu.memory_space<vmem>>, vector<1x8x128xf32>
    %3 = vector.shape_cast %2 : vector<1x8x128xf32> to vector<8x128xf32>
    %4 = vector.shape_cast %0 : vector<8x128xf32> to vector<1x8x128xf32>
    tpu.vector_store %arg7[%c0_3, %c0_4, %c0_5], %4 {strides = array<i32>} : memref<5x8x128xf32, #tpu.memory_space<vmem>>, vector<1x8x128xf32>,
    %5 = vector.extract_strided_slice %0 {offsets = [0, 0], sizes = [4, 128], strides = [1, 1]} : vector<8x128xf32> to vector<4x128xf32>
    %6 = vector.extract_strided_slice %0 {offsets = [4, 0], sizes = [4, 128], strides = [1, 1]} : vector<8x128xf32> to vector<4x128xf32>
    %cst = arith.constant 0.000000e+00 : f32
    %7 = vector.broadcast %cst : f32 to vector<1x128xf32>
    %8 = tpu.concatenate %5, %1 in 0 : vector<4x128xf32>, vector<4x128xf32> -> vector<8x128xf32>
    %c0_6 = arith.constant 0 : index
    %c0_7 = arith.constant 0 : index
    %c0_8 = arith.constant 0 : index
    %9 = vector.load %arg3[%c0_6, %c0_7, %c0_8] : memref<4x16x8xf32, #tpu.memory_space<vmem>>, vector<1x16x8xf32>
    %10 = vector.shape_cast %9 : vector<1x16x8xf32> to vector<16x8xf32>
    %cst_9 = arith.constant dense<0.000000e+00> : vector<16x128xf32>
    %11 = tpu.matmul %10, %8, %cst_9 {dimension_numbers = #tpu.dot_dimension_numbers<[1], [0], [0], [1], [0, 0, 1, 1], [], []>} : vector<16x8xf32>, vector<8x128xf32>, vector<16x128xf32> -> vector<16x128xf32>
    %c0_10 = arith.constant 0 : index
    %c0_11 = arith.constant 0 : index
    %c0_12 = arith.constant 0 : index
    %12 = vector.load %arg4[%c0_10, %c0_11, %c0_12] : memref<4x16x1xf32, #tpu.memory_space<vmem>>, vector<1x16x1xf32>
    %13 = vector.shape_cast %12 : vector<1x16x1xf32> to vector<16x1xf32>
    %14 = vector.broadcast %13 : vector<16x1xf32> to vector<16x128xf32>
    %15 = arith.addf %11, %14 : vector<16x128xf32>
    %16 = math.tanh %15 : vector<16x128xf32>
    %c0_13 = arith.constant 0 : index
    %c0_14 = arith.constant 0 : index
    %c0_15 = arith.constant 0 : index
    %17 = vector.load %arg5[%c0_13, %c0_14, %c0_15] : memref<4x8x16xf32, #tpu.memory_space<vmem>>, vector<1x8x16xf32>
    %18 = vector.shape_cast %17 : vector<1x8x16xf32> to vector<8x16xf32>
    %cst_16 = arith.constant dense<0.000000e+00> : vector<8x128xf32>
    %19 = tpu.matmul %18, %16, %cst_16 {dimension_numbers = #tpu.dot_dimension_numbers<[1], [0], [0], [1], [0, 0, 1, 1], [], []>} : vector<8x16xf32>, vector<16x128xf32>, vector<8x128xf32> -> vector<8x128xf32>
    %c0_17 = arith.constant 0 : index
    %c0_18 = arith.constant 0 : index
    %c0_19 = arith.constant 0 : index
    %20 = vector.load %arg6[%c0_17, %c0_18, %c0_19] : memref<4x8x1xf32, #tpu.memory_space<vmem>>, vector<1x8x1xf32>
    %21 = vector.shape_cast %20 : vector<1x8x1xf32> to vector<8x1xf32>
    %22 = vector.broadcast %21 : vector<8x1xf32> to vector<8x128xf32>
    %23 = arith.addf %19, %22 : vector<8x128xf32>
    %24 = vector.extract_strided_slice %23 {offsets = [0, 0], sizes = [4, 128], strides = [1, 1]} : vector<8x128xf32> to vector<4x128xf32>
    %25 = math.tanh %24 : vector<4x128xf32>
    %26 = vector.extract_strided_slice %23 {offsets = [4, 0], sizes = [4, 128], strides = [1, 1]} : vector<8x128xf32> to vector<4x128xf32>
    %27 = math.exp %25 : vector<4x128xf32>
    %28 = arith.mulf %6, %27 : vector<4x128xf32>
    %29 = arith.addf %28, %26 : vector<4x128xf32>
    %cst_20 = arith.constant dense<0.000000e+00> : vector<128xf32>
    %30 = vector.multi_reduction <add>, %25, %cst_20 [0] : vector<4x128xf32> to vector<128xf32>
    %31 = vector.shape_cast %30 : vector<128xf32> to vector<1x128xf32>
    %32 = arith.addf %7, %31 : vector<1x128xf32>
    %33 = tpu.concatenate %5, %29 in 0 : vector<4x128xf32>, vector<4x128xf32> -> vector<8x128xf32>
    %c1 = arith.constant 1 : index
    %c0_21 = arith.constant 0 : index
    %c0_22 = arith.constant 0 : index
    %34 = vector.load %arg7[%c1, %c0_21, %c0_22] : memref<5x8x128xf32, #tpu.memory_space<vmem>>, vector<1x8x128xf32>
    %35 = vector.shape_cast %34 : vector<1x8x128xf32> to vector<8x128xf32>
    %36 = vector.shape_cast %33 : vector<8x128xf32> to vector<1x8x128xf32>
    tpu.vector_store %arg7[%c1, %c0_21, %c0_22], %36 {strides = array<i32>} : memref<5x8x128xf32, #tpu.memory_space<vmem>>, vector<1x8x128xf32>,
    %37 = tpu.concatenate %29, %1 in 0 : vector<4x128xf32>, vector<4x128xf32> -> vector<8x128xf32>
    %c1_23 = arith.constant 1 : index
    %c0_24 = arith.constant 0 : index
    %c0_25 = arith.constant 0 : index
    %38 = vector.load %arg3[%c1_23, %c0_24, %c0_25] : memref<4x16x8xf32, #tpu.memory_space<vmem>>, vector<1x16x8xf32>
    %39 = vector.shape_cast %38 : vector<1x16x8xf32> to vector<16x8xf32>
    %cst_26 = arith.constant dense<0.000000e+00> : vector<16x128xf32>
    %40 = tpu.matmul %39, %37, %cst_26 {dimension_numbers = #tpu.dot_dimension_numbers<[1], [0], [0], [1], [0, 0, 1, 1], [], []>} : vector<16x8xf32>, vector<8x128xf32>, vector<16x128xf32> -> vector<16x128xf32>
    %c1_27 = arith.constant 1 : index
    %c0_28 = arith.constant 0 : index
    %c0_29 = arith.constant 0 : index
    %41 = vector.load %arg4[%c1_27, %c0_28, %c0_29] : memref<4x16x1xf32, #tpu.memory_space<vmem>>, vector<1x16x1xf32>
    %42 = vector.shape_cast %41 : vector<1x16x1xf32> to vector<16x1xf32>
    %43 = vector.broadcast %42 : vector<16x1xf32> to vector<16x128xf32>
    %44 = arith.addf %40, %43 : vector<16x128xf32>
    %45 = math.tanh %44 : vector<16x128xf32>
    %c1_30 = arith.constant 1 : index
    %c0_31 = arith.constant 0 : index
    %c0_32 = arith.constant 0 : index
    %46 = vector.load %arg5[%c1_30, %c0_31, %c0_32] : memref<4x8x16xf32, #tpu.memory_space<vmem>>, vector<1x8x16xf32>
    %47 = vector.shape_cast %46 : vector<1x8x16xf32> to vector<8x16xf32>
    %cst_33 = arith.constant dense<0.000000e+00> : vector<8x128xf32>
    %48 = tpu.matmul %47, %45, %cst_33 {dimension_numbers = #tpu.dot_dimension_numbers<[1], [0], [0], [1], [0, 0, 1, 1], [], []>} : vector<8x16xf32>, vector<16x128xf32>, vector<8x128xf32> -> vector<8x128xf32>
    %c1_34 = arith.constant 1 : index
    %c0_35 = arith.constant 0 : index
    %c0_36 = arith.constant 0 : index
    %49 = vector.load %arg6[%c1_34, %c0_35, %c0_36] : memref<4x8x1xf32, #tpu.memory_space<vmem>>, vector<1x8x1xf32>
    %50 = vector.shape_cast %49 : vector<1x8x1xf32> to vector<8x1xf32>
    %51 = vector.broadcast %50 : vector<8x1xf32> to vector<8x128xf32>
    %52 = arith.addf %48, %51 : vector<8x128xf32>
    %53 = vector.extract_strided_slice %52 {offsets = [0, 0], sizes = [4, 128], strides = [1, 1]} : vector<8x128xf32> to vector<4x128xf32>
    %54 = math.tanh %53 : vector<4x128xf32>
    %55 = vector.extract_strided_slice %52 {offsets = [4, 0], sizes = [4, 128], strides = [1, 1]} : vector<8x128xf32> to vector<4x128xf32>
    %56 = math.exp %54 : vector<4x128xf32>
    %57 = arith.mulf %5, %56 : vector<4x128xf32>
    %58 = arith.addf %57, %55 : vector<4x128xf32>
    %cst_37 = arith.constant dense<0.000000e+00> : vector<128xf32>
    %59 = vector.multi_reduction <add>, %54, %cst_37 [0] : vector<4x128xf32> to vector<128xf32>
    %60 = vector.shape_cast %59 : vector<128xf32> to vector<1x128xf32>
    %61 = arith.addf %32, %60 : vector<1x128xf32>
    %62 = tpu.concatenate %58, %29 in 0 : vector<4x128xf32>, vector<4x128xf32> -> vector<8x128xf32>
    %c2 = arith.constant 2 : index
    %c0_38 = arith.constant 0 : index
    %c0_39 = arith.constant 0 : index
    %63 = vector.load %arg7[%c2, %c0_38, %c0_39] : memref<5x8x128xf32, #tpu.memory_space<vmem>>, vector<1x8x128xf32>
    %64 = vector.shape_cast %63 : vector<1x8x128xf32> to vector<8x128xf32>
    %65 = vector.shape_cast %62 : vector<8x128xf32> to vector<1x8x128xf32>
    tpu.vector_store %arg7[%c2, %c0_38, %c0_39], %65 {strides = array<i32>} : memref<5x8x128xf32, #tpu.memory_space<vmem>>, vector<1x8x128xf32>,
    %66 = tpu.concatenate %58, %1 in 0 : vector<4x128xf32>, vector<4x128xf32> -> vector<8x128xf32>
    %c2_40 = arith.constant 2 : index
    %c0_41 = arith.constant 0 : index
    %c0_42 = arith.constant 0 : index
    %67 = vector.load %arg3[%c2_40, %c0_41, %c0_42] : memref<4x16x8xf32, #tpu.memory_space<vmem>>, vector<1x16x8xf32>
    %68 = vector.shape_cast %67 : vector<1x16x8xf32> to vector<16x8xf32>
    %cst_43 = arith.constant dense<0.000000e+00> : vector<16x128xf32>
    %69 = tpu.matmul %68, %66, %cst_43 {dimension_numbers = #tpu.dot_dimension_numbers<[1], [0], [0], [1], [0, 0, 1, 1], [], []>} : vector<16x8xf32>, vector<8x128xf32>, vector<16x128xf32> -> vector<16x128xf32>
    %c2_44 = arith.constant 2 : index
    %c0_45 = arith.constant 0 : index
    %c0_46 = arith.constant 0 : index
    %70 = vector.load %arg4[%c2_44, %c0_45, %c0_46] : memref<4x16x1xf32, #tpu.memory_space<vmem>>, vector<1x16x1xf32>
    %71 = vector.shape_cast %70 : vector<1x16x1xf32> to vector<16x1xf32>
    %72 = vector.broadcast %71 : vector<16x1xf32> to vector<16x128xf32>
    %73 = arith.addf %69, %72 : vector<16x128xf32>
    %74 = math.tanh %73 : vector<16x128xf32>
    %c2_47 = arith.constant 2 : index
    %c0_48 = arith.constant 0 : index
    %c0_49 = arith.constant 0 : index
    %75 = vector.load %arg5[%c2_47, %c0_48, %c0_49] : memref<4x8x16xf32, #tpu.memory_space<vmem>>, vector<1x8x16xf32>
    %76 = vector.shape_cast %75 : vector<1x8x16xf32> to vector<8x16xf32>
    %cst_50 = arith.constant dense<0.000000e+00> : vector<8x128xf32>
    %77 = tpu.matmul %76, %74, %cst_50 {dimension_numbers = #tpu.dot_dimension_numbers<[1], [0], [0], [1], [0, 0, 1, 1], [], []>} : vector<8x16xf32>, vector<16x128xf32>, vector<8x128xf32> -> vector<8x128xf32>
    %c2_51 = arith.constant 2 : index
    %c0_52 = arith.constant 0 : index
    %c0_53 = arith.constant 0 : index
    %78 = vector.load %arg6[%c2_51, %c0_52, %c0_53] : memref<4x8x1xf32, #tpu.memory_space<vmem>>, vector<1x8x1xf32>
    %79 = vector.shape_cast %78 : vector<1x8x1xf32> to vector<8x1xf32>
    %80 = vector.broadcast %79 : vector<8x1xf32> to vector<8x128xf32>
    %81 = arith.addf %77, %80 : vector<8x128xf32>
    %82 = vector.extract_strided_slice %81 {offsets = [0, 0], sizes = [4, 128], strides = [1, 1]} : vector<8x128xf32> to vector<4x128xf32>
    %83 = math.tanh %82 : vector<4x128xf32>
    %84 = vector.extract_strided_slice %81 {offsets = [4, 0], sizes = [4, 128], strides = [1, 1]} : vector<8x128xf32> to vector<4x128xf32>
    %85 = math.exp %83 : vector<4x128xf32>
    %86 = arith.mulf %29, %85 : vector<4x128xf32>
    %87 = arith.addf %86, %84 : vector<4x128xf32>
    %cst_54 = arith.constant dense<0.000000e+00> : vector<128xf32>
    %88 = vector.multi_reduction <add>, %83, %cst_54 [0] : vector<4x128xf32> to vector<128xf32>
    %89 = vector.shape_cast %88 : vector<128xf32> to vector<1x128xf32>
    %90 = arith.addf %61, %89 : vector<1x128xf32>
    %91 = tpu.concatenate %58, %87 in 0 : vector<4x128xf32>, vector<4x128xf32> -> vector<8x128xf32>
    %c3 = arith.constant 3 : index
    %c0_55 = arith.constant 0 : index
    %c0_56 = arith.constant 0 : index
    %92 = vector.load %arg7[%c3, %c0_55, %c0_56] : memref<5x8x128xf32, #tpu.memory_space<vmem>>, vector<1x8x128xf32>
    %93 = vector.shape_cast %92 : vector<1x8x128xf32> to vector<8x128xf32>
    %94 = vector.shape_cast %91 : vector<8x128xf32> to vector<1x8x128xf32>
    tpu.vector_store %arg7[%c3, %c0_55, %c0_56], %94 {strides = array<i32>} : memref<5x8x128xf32, #tpu.memory_space<vmem>>, vector<1x8x128xf32>,
    %95 = tpu.concatenate %87, %1 in 0 : vector<4x128xf32>, vector<4x128xf32> -> vector<8x128xf32>
    %c3_57 = arith.constant 3 : index
    %c0_58 = arith.constant 0 : index
    %c0_59 = arith.constant 0 : index
    %96 = vector.load %arg3[%c3_57, %c0_58, %c0_59] : memref<4x16x8xf32, #tpu.memory_space<vmem>>, vector<1x16x8xf32>
    %97 = vector.shape_cast %96 : vector<1x16x8xf32> to vector<16x8xf32>
    %cst_60 = arith.constant dense<0.000000e+00> : vector<16x128xf32>
    %98 = tpu.matmul %97, %95, %cst_60 {dimension_numbers = #tpu.dot_dimension_numbers<[1], [0], [0], [1], [0, 0, 1, 1], [], []>} : vector<16x8xf32>, vector<8x128xf32>, vector<16x128xf32> -> vector<16x128xf32>
    %c3_61 = arith.constant 3 : index
    %c0_62 = arith.constant 0 : index
    %c0_63 = arith.constant 0 : index
    %99 = vector.load %arg4[%c3_61, %c0_62, %c0_63] : memref<4x16x1xf32, #tpu.memory_space<vmem>>, vector<1x16x1xf32>
    %100 = vector.shape_cast %99 : vector<1x16x1xf32> to vector<16x1xf32>
    %101 = vector.broadcast %100 : vector<16x1xf32> to vector<16x128xf32>
    %102 = arith.addf %98, %101 : vector<16x128xf32>
    %103 = math.tanh %102 : vector<16x128xf32>
    %c3_64 = arith.constant 3 : index
    %c0_65 = arith.constant 0 : index
    %c0_66 = arith.constant 0 : index
    %104 = vector.load %arg5[%c3_64, %c0_65, %c0_66] : memref<4x8x16xf32, #tpu.memory_space<vmem>>, vector<1x8x16xf32>
    %105 = vector.shape_cast %104 : vector<1x8x16xf32> to vector<8x16xf32>
    %cst_67 = arith.constant dense<0.000000e+00> : vector<8x128xf32>
    %106 = tpu.matmul %105, %103, %cst_67 {dimension_numbers = #tpu.dot_dimension_numbers<[1], [0], [0], [1], [0, 0, 1, 1], [], []>} : vector<8x16xf32>, vector<16x128xf32>, vector<8x128xf32> -> vector<8x128xf32>
    %c3_68 = arith.constant 3 : index
    %c0_69 = arith.constant 0 : index
    %c0_70 = arith.constant 0 : index
    %107 = vector.load %arg6[%c3_68, %c0_69, %c0_70] : memref<4x8x1xf32, #tpu.memory_space<vmem>>, vector<1x8x1xf32>
    %108 = vector.shape_cast %107 : vector<1x8x1xf32> to vector<8x1xf32>
    %109 = vector.broadcast %108 : vector<8x1xf32> to vector<8x128xf32>
    %110 = arith.addf %106, %109 : vector<8x128xf32>
    %111 = vector.extract_strided_slice %110 {offsets = [0, 0], sizes = [4, 128], strides = [1, 1]} : vector<8x128xf32> to vector<4x128xf32>
    %112 = math.tanh %111 : vector<4x128xf32>
    %113 = vector.extract_strided_slice %110 {offsets = [4, 0], sizes = [4, 128], strides = [1, 1]} : vector<8x128xf32> to vector<4x128xf32>
    %114 = math.exp %112 : vector<4x128xf32>
    %115 = arith.mulf %58, %114 : vector<4x128xf32>
    %116 = arith.addf %115, %113 : vector<4x128xf32>
    %cst_71 = arith.constant dense<0.000000e+00> : vector<128xf32>
    %117 = vector.multi_reduction <add>, %112, %cst_71 [0] : vector<4x128xf32> to vector<128xf32>
    %118 = vector.shape_cast %117 : vector<128xf32> to vector<1x128xf32>
    %119 = arith.addf %90, %118 : vector<1x128xf32>
    %120 = tpu.concatenate %116, %87 in 0 : vector<4x128xf32>, vector<4x128xf32> -> vector<8x128xf32>
    %c4 = arith.constant 4 : index
    %c0_72 = arith.constant 0 : index
    %c0_73 = arith.constant 0 : index
    %121 = vector.load %arg7[%c4, %c0_72, %c0_73] : memref<5x8x128xf32, #tpu.memory_space<vmem>>, vector<1x8x128xf32>
    %122 = vector.shape_cast %121 : vector<1x8x128xf32> to vector<8x128xf32>
    %123 = vector.shape_cast %120 : vector<8x128xf32> to vector<1x8x128xf32>
    tpu.vector_store %arg7[%c4, %c0_72, %c0_73], %123 {strides = array<i32>} : memref<5x8x128xf32, #tpu.memory_space<vmem>>, vector<1x8x128xf32>,
    %124 = arith.mulf %116, %116 : vector<4x128xf32>
    %cst_74 = arith.constant dense<0.000000e+00> : vector<128xf32>
    %125 = vector.multi_reduction <add>, %124, %cst_74 [0] : vector<4x128xf32> to vector<128xf32>
    %126 = vector.shape_cast %125 : vector<128xf32> to vector<1x128xf32>
    %127 = arith.mulf %87, %87 : vector<4x128xf32>
    %cst_75 = arith.constant dense<0.000000e+00> : vector<128xf32>
    %128 = vector.multi_reduction <add>, %127, %cst_75 [0] : vector<4x128xf32> to vector<128xf32>
    %129 = vector.shape_cast %128 : vector<128xf32> to vector<1x128xf32>
    %130 = arith.addf %126, %129 : vector<1x128xf32>
    %cst_76 = arith.constant -5.000000e-01 : f32
    %131 = vector.broadcast %cst_76 : f32 to vector<1x128xf32>
    %132 = arith.mulf %131, %130 : vector<1x128xf32>
    %cst_77 = arith.constant 7.35150814 : f32
    %133 = vector.broadcast %cst_77 : f32 to vector<1x128xf32>
    %134 = arith.subf %132, %133 : vector<1x128xf32>
    %135 = tpu.concatenate %134, %119 in 0 : vector<1x128xf32>, vector<1x128xf32> -> vector<2x128xf32>
    %c0_78 = arith.constant 0 : index
    %c0_79 = arith.constant 0 : index
    %136 = vector.load %arg8[%c0_78, %c0_79] : memref<2x128xf32, #tpu.memory_space<vmem>>, vector<2x128xf32>
    tpu.vector_store %arg8[%c0_78, %c0_79], %135 {strides = array<i32>} : memref<2x128xf32, #tpu.memory_space<vmem>>, vector<2x128xf32>,
    return
  }
  func.func @transform_0(%arg0: i32) -> (i32, i32) {
    %c0_i32 = arith.constant 0 : i32
    %c0_i32_0 = arith.constant 0 : i32
    return %c0_i32, %arg0 : i32, i32
  }
  func.func @transform_1(%arg0: i32) -> (i32, i32) {
    %c0_i32 = arith.constant 0 : i32
    %c0_i32_0 = arith.constant 0 : i32
    return %c0_i32, %arg0 : i32, i32
  }
  func.func @transform_2(%arg0: i32) -> (i32, i32, i32) {
    %c0_i32 = arith.constant 0 : i32
    %c0_i32_0 = arith.constant 0 : i32
    %c0_i32_1 = arith.constant 0 : i32
    %c0_i32_2 = arith.constant 0 : i32
    return %c0_i32, %c0_i32_0, %c0_i32_1 : i32, i32, i32
  }
  func.func @transform_3(%arg0: i32) -> (i32, i32, i32) {
    %c0_i32 = arith.constant 0 : i32
    %c0_i32_0 = arith.constant 0 : i32
    %c0_i32_1 = arith.constant 0 : i32
    %c0_i32_2 = arith.constant 0 : i32
    return %c0_i32, %c0_i32_0, %c0_i32_1 : i32, i32, i32
  }
  func.func @transform_4(%arg0: i32) -> (i32, i32, i32) {
    %c0_i32 = arith.constant 0 : i32
    %c0_i32_0 = arith.constant 0 : i32
    %c0_i32_1 = arith.constant 0 : i32
    %c0_i32_2 = arith.constant 0 : i32
    return %c0_i32, %c0_i32_0, %c0_i32_1 : i32, i32, i32
  }
  func.func @transform_5(%arg0: i32) -> (i32, i32, i32) {
    %c0_i32 = arith.constant 0 : i32
    %c0_i32_0 = arith.constant 0 : i32
    %c0_i32_1 = arith.constant 0 : i32
    %c0_i32_2 = arith.constant 0 : i32
    return %c0_i32, %c0_i32_0, %c0_i32_1 : i32, i32, i32
  }
  func.func @transform_6(%arg0: i32) -> (i32, i32, i32) {
    %c0_i32 = arith.constant 0 : i32
    %c0_i32_0 = arith.constant 0 : i32
    %c0_i32_1 = arith.constant 0 : i32
    return %c0_i32, %c0_i32_0, %arg0 : i32, i32, i32
  }
  func.func @transform_7(%arg0: i32) -> (i32, i32) {
    %c0_i32 = arith.constant 0 : i32
    %c0_i32_0 = arith.constant 0 : i32
    return %c0_i32, %arg0 : i32, i32
  }
}

</mosaic_0001>

<bundles_post_ra>
// kernel: tpu_custom_call.1
= control target key start
LH: loop header
LB: loop body
LE: loop exit
PB: predicated region body
PF: predicated region fallthrough
CT: control target
= control target key end

     0   :  { %13 = vsyncpa [#allocation3], 0  ;;  %s1924_s0 = inlined_call_operand.vmem [shape: f32[8,256], index: 0, kind: input, shape index: {}]   ;;  %s1925_s1 = inlined_call_operand.vmem [shape: f32[4,256], index: 1, kind: input, shape index: {}]   ;;  %s1926_s2 = inlined_call_operand.vmem [shape: f32[4,16,8], index: 2, kind: input, shape index: {}]   ;;  %s1927_s3 = inlined_call_operand.vmem [shape: f32[4,16,1], index: 3, kind: input, shape index: {}]   ;;  %s1928_s4 = inlined_call_operand.vmem [shape: f32[4,8,16], index: 4, kind: input, shape index: {}]   ;;  %s1929_s5 = inlined_call_operand.vmem [shape: f32[4,8,1], index: 5, kind: input, shape index: {}]   ;;  %s1930_s6 = inlined_call_operand.hbm [shape: f32[5,8,256], index: 6, kind: output, shape index: {0}]   ;;  %s1931_s7 = inlined_call_operand.hbm [shape: f32[2,256], index: 7, kind: output, shape index: {1}]  }
   0x1   :  { %15 = vsyncpa [#allocation3 + $0x1], 0 }
   0x2   :  { %16 = vsyncpa [#allocation5], 0 }
   0x3   :  { %18 = vsyncpa [#allocation5 + $0x1], 0  ;;  %s1641_s24 = smov 0   ;;  %s1643_s25 = smov 0  }
   0x4   :  { %s1645_s26 = smov 0   ;;  %s1647_s27 = smov 0  }
   0x5 LB: > { %s1662_s28 = sadd.s32 4294967295, %s1590_s27   ;;  %s1279_s29 = sadd.s32 4294967294, %s1590_s27   ;;  %s1590_s27 = sphi %s1647_s27, %s1937_s27   ;;  %s1586_s26 = sphi %s1645_s26, %s1936_s26   ;;  %s1582_s25 = sphi %s1643_s25, %s1935_s25   ;;  %s1578_s24 = sphi %s1641_s24, %s1934_s24  }
   0x6   : > { %s1666_s30 = sadd.s32 1, %s1590_s27   ;;  %s167_s8 = sadd.s32 1, %s1586_s26 }
   0x7   : > { %s164_s9 = ssub.s32 %s1590_s27, %s1666_s30  ;;  %p177_p0 = scmp.ne.s32.totalorder %s1586_s26, %s1582_s25 }
   0x8   : > { %p165_p1 = scmp.eq.s32.totalorder %s164_s9, 0  ;;  %p178_p2 = scmp.eq.s32.totalorder %s1662_s28, 1 }
   0x9   : > { %p183_p3 = scmp.ne.s32.totalorder %s1582_s25, %s1578_s24  ;;  %p184_p4 = scmp.eq.s32.totalorder %s1279_s29, 1 }
   0xa   : > { %s1677_s10 = scalar_select %p165_p1, %s1586_s26, %s167_s8  }
   0xb   : > { %p1679_p5 = por %p178_p2, %p177_p0  ;;  %p1683_p6 = por %p184_p4, %p183_p3 }
   0xc   : > { %p1282_p7 = scmp.ge.s32.totalorder %s1590_s27, 1  ;;  %p254_p8 = scmp.lt.s32.totalorder %s1590_s27, 3 }
   0xe   : > { %p255_p9 = pnand %p1282_p7, %p254_p8 }
   0xf   : > { %s1690_s13 = sand.u32 (!%p255_p9), 1, %s1582_s25   ;;  %p294_p10 = scmp.lt.s32.totalorder (!%p255_p9), %s1662_s28, 1  ;;  %v310_v0 = vld [vmem:[%s1926_s2] sm:$0xff] (!%p255_p9)  ;;  %vm324_vm0 = vcmask (!%p255_p9), 64512   ;;  %v1592_v2 = vmov (!%p255_p9), 0   ;;  %v313_v3 = vld [vmem:[%s1927_s3 + $0x8] sm:$0xff] (!%p255_p9) }
  0x10   : > { %258 = sbr.rel (%p255_p9) target bundleno = 1991 (0x7c7), region = 44  ;;  %1352 = vmatprep.mubr.msk.f32.mxu0 (!%p255_p9), %vm324_vm0, %v310_v0  ;;  %v312_v1 = vld [vmem:[%s1927_s3] sm:$0xff] (!%p255_p9)  ;;  %1462 = vset.pattern.permute.xlu0 (!%p255_p9), %v1592_v2  ;;  %vm308_vm1 = vcmask (!%p255_p9), 1043456   ;;  %v1293_v7 = vld [vmem:[%s1927_s3 + $0x18] sm:$0xff] (!%p255_p9)  ;;  %v311_v9 = vld [vmem:[%s1926_s2 + $0x8] sm:$0xff] (!%p255_p9)  ;;  %v1593_v13 = vmov (!%p255_p9), 0.0|0.0  }
  0x11   : > { %s1410_s16 = smul.u32 (!%p255_p9), 40, %s1690_s13  ;;  %1463 = vset.pattern.permute.xlu1 (!%p255_p9), %v1592_v2  ;;  %316 = vperm.xlu0 (!%p255_p9), %1462, %v312_v1   ;;  %v1302_v10 = vld [vmem:[%s1927_s3 + $0x20] sm:$0xff] (!%p255_p9)  ;;  %v1307_v11 = vld [vmem:[%s1929_s5 + $0x10] sm:$0xff] (!%p255_p9)  ;;  %v1313_v12 = vld [vmem:[%s1927_s3 + $0x38] sm:$0xff] (!%p255_p9)  ;;  %vm1594_vm2 = vmmov (!%p255_p9), 0   ;;  %v1595_v14 = vmov (!%p255_p9), 0.0  }
  0x12   : > { %1398 = vmatprep.subr.bf16.mxu1 (!%p255_p9), %v1593_v13  ;;  %1359 = vmatprep.mubr.msk.f32.mxu1 (!%p255_p9), %vm1594_vm2, %v1595_v14  ;;  %v409_v15 = vld [vmem:[%s1929_s5] sm:$0xff] (!%p255_p9)  ;;  %v1292_v16 = vld [vmem:[%s1927_s3 + $0x10] sm:$0xff] (!%p255_p9)  ;;  %v1297_v17 = vld [vmem:[%s1929_s5 + $0x8] sm:$0xff] (!%p255_p9)  ;;  %vm415_vm3 = vcmask (!%p255_p9), 130048   ;;  %s1322_s29 = sshll.u32 (!%p255_p9), %s1662_s28, 7  ;;  %s1596_s22 = smov (!%p255_p9), [#allocation2]  }
  0x13   : > { %s1713_s18 = scalar_lea.vmem (!%p255_p9), [#allocation2], %s1410_s16  ;;  %412 = vperm.xlu1 (!%p255_p9), %1463, %v409_v15   ;;  %v1303_v18 = vld [vmem:[%s1927_s3 + $0x28] sm:$0xff] (!%p255_p9)  ;;  %v1312_v19 = vld [vmem:[%s1927_s3 + $0x30] sm:$0xff] (!%p255_p9)  ;;  %v1317_v20 = vld [vmem:[%s1929_s5 + $0x18] sm:$0xff] (!%p255_p9)  ;;  %s1845_s15 = scalar_lea.hbm (!%p255_p9), %s1930_s6, %s1322_s29 }
  0x14   : > { %v408_v30 = vld [vmem:[%s1928_s4] sm:$0xff] (!%p255_p9)  ;;  %v1290_v31 = vld [vmem:[%s1926_s2 + $0x10] sm:$0xff] (!%p255_p9)  ;;  %v1291_v45 = vld [vmem:[%s1926_s2 + $0x18] sm:$0xff] (!%p255_p9)  ;;  %s1160_s8 = sshll.u32 (!%p255_p9), %s1713_s18, 4  ;;  %s1847_s8 = int_to_ptr.vmem [resolvable:$true] %s1160_s8 }
  0x15   : > { %321 = vperm.xlu0 (!%p255_p9), %1462, %v313_v3   ;;  %v1296_v55 = vld [vmem:[%s1928_s4 + $0x8] sm:$0xff] (!%p255_p9)  ;;  %v1300_v56 = vld [vmem:[%s1926_s2 + $0x20] sm:$0xff] (!%p255_p9) }
  0x17   : > { %s295_s19 = scalar_select %p294_p10, %s1662_s28, 1  ;;  %520 = vperm.xlu1 %1463, %v1292_v16  }
  0x19   : > { %s1284_s20 = sshll.u32 %s295_s19, 3  ;;  %s1285_s21 = sshll.u32 %s295_s19, 2  ;;  %525 = vperm.xlu0 %1462, %v1293_v7  }
  0x1a   : > { %s297_s9 = scalar_lea.vmem %s1924_s0, %s1284_s20  ;;  %s301_s17 = scalar_lea.vmem %s1925_s1, %s1285_s21 }
  0x1b   : > { %v1711_v4 = vld [vmem:[%s297_s9] sm:$0xff]  ;;  %617 = vperm.xlu1 %1463, %v1297_v17   ;;  %s1496_s19 = scalar_lea.vmem %s1847_s8, 640  ;;  %s1500_s20 = sshll.u32 %s1596_s22, 4  ;;  %s1501_s20 = int_to_ptr.vmem [resolvable:$false] %s1500_s20 }
  0x1c   : > { %v303_v5 = vld [vmem:[%s301_s17] sm:$0xf]  ;;  %304 = vst [vmem:[%s1713_s18] sm:$0xff] %v1711_v4  ;;  %s1143_s17 = scalar_lea.sflag [#allocation3], %s1690_s13  ;;  %p1497_p11 = scmp.ne.s32.totalorder %s1847_s8, %s1496_s19 }
  0x1d   : > { %v1717_v6 = vrot.slane %v303_v5, 4  ;;  %721 = vperm.xlu0 %1462, %v1302_v10   ;;  %s1502_s21 = scalar_lea.vmem %s1501_s20, 1280  ;;  %p1503_p0 = scmp.lt.s32.totalorder %s1847_s8, %s1501_s20 }
  0x1e   : > { %p1498_p12 = pnand %p1497_p11, %p1679_p5  ;;  %p1504_p1 = scmp.lt.s32.totalorder %s1502_s21, %s1496_s19 }
  0x1f   : > { %v309_v8 = vsel %vm308_vm1, %v1711_v4, %v1717_v6  ;;  %726 = vperm.xlu1 %1463, %v1303_v18  }
  0x20   : > { %1350 = vmatprep.subr.mxu0 %v309_v8  ;;  %p1499_p13 = pneg %p1498_p12  ;;  %p1505_p2 = por %p1504_p1, %p1503_p0 }
  0x21   : > { %1351 = vmatpush3.msra.mxu0 %v309_v8  ;;  %818 = vperm.xlu0 %1462, %v1307_v11  }
  0x22   : > { %1353 = vmatmul.mubr.msk.f32.vlgmr.msra.gmra.mrb[0].mxu0 %vm324_vm0, %v311_v9  ;;  %p1506_p3 = pnand %p1505_p2, %p1499_p13 }
  0x23   : > { %925 = vperm.xlu1 %1463, %v1312_v19   ;;  %1364 = vmatprep.mubr.msk.f32.mxu0 %vm324_vm0, %v1290_v31 }
  0x25   : > { %930 = vperm.xlu0 %1462, %v1313_v12  }
  0x27   : > { %1022 = vperm.xlu1 %1463, %v1317_v20  }
  0x90   : > { %v317_v21 = vpop.permute.xlu0 %316 }
  0x92   : > { %v413_v32 = vpop.permute.xlu1 %412 }
  0x94   : > { %v322_v22 = vpop.permute.xlu0 %321 }
  0x96   : > { %v521_v48 = vpop.permute.xlu1 %520 }
  0x98   : > { %v526_v46 = vpop.permute.xlu0 %525 }
  0x9a   : > { %v618_v57 = vpop.permute.xlu1 %617 }
  0xf5   : > { %v1354_v23 = vpop.f32.mrb[0].mxu0 }
  0xf6   : > { %v403_v24 = vadd.f32 %v1354_v23, %v322_v22  ;;  %v397_v25 = vpop.f32.mrb[1].mxu0 }
  0xf7   : > { %v398_v26 = vadd.f32 %v397_v25, %v317_v21 }
  0xf8   : > { %1464 = vtanh.f32 %v403_v24  ;;  %v1301_v24 = vld [vmem:[%s1926_s2 + $0x28] sm:$0xff] }
  0xf9   : > { %1466 = vtanh.f32 %v398_v26  ;;  %v722_v26 = vpop.permute.xlu0 %721 }
 0x102   : > { %v1465_v27 = vpop.eup %1464 }
 0x103   : > { %v1467_v28 = vpop.eup %1466 }
 0x104   : > { %v1399_v29 = vpack.c.bf16 %v1465_v27, %v1467_v28 }
 0x106   : > { %1400 = vmatpush3.bf16.msra.mxu1 %v1399_v29 }
 0x107   : > { %1401 = vmatprep.subr.bf16.mxu1 %v1593_v13 }
 0x109   : > { %1360 = vmatmul.mubr.msk.f32.vlgmr.msra.gmra.mrb[0].mxu1 %vm415_vm3, %v408_v30 }
 0x10a   : > { %1371 = vmatprep.mubr.msk.f32.mxu1 %vm1594_vm2, %v1595_v14 }
 0x1dc   : > { %v485_v33 = vpop.f32.mrb[0].mxu1 }
 0x1dd   : > { %v486_v34 = vadd.f32 %v485_v33, %v413_v32  ;;  %v1361_v35 = vpop.f32.mrb[1].mxu1  ;;  %v1306_v33 = vld [vmem:[%s1928_s4 + $0x10] sm:$0xff] }
 0x1de   : > { %v819_v35 = vpop.permute.xlu0 %818 }
 0x1df   : > { %1468 = vtanh.f32 %v486_v34 }
 0x1e9   : > { %v1469_v36 = vpop.eup %1468 }
 0x1ea   : > { %v490_v37 = vmul.f32 1.442695, %v1469_v36  ;;  %v497_v61 = vsel %vm308_vm1, %v1469_v36, 0.0 }
 0x1eb   : > { %v498_v62 = vrot.slane %v497_v61, 4 }
 0x1ec   : > { %1470 = vpow2.f32 %v490_v37 }
 0x1ed   : > { %v499_v63 = vadd.f32 %v498_v62, %v497_v61 }
 0x1ef   : > { %v500_v1 = vrot.slane %v499_v63, 2 }
 0x1f1   : > { %v501_v7 = vadd.f32 %v500_v1, %v499_v63 }
 0x1f3   : > { %v502_v11 = vrot.slane %v501_v7, 1 }
 0x1f5   : > { %v503_v15 = vadd.f32 %v502_v11, %v501_v7 }
 0x1f6   : > { %v1471_v38 = vpop.eup %1470 }
 0x1f7   : > { %v493_v39 = vrot.slane %v1471_v38, 4 }
 0x1f9   : > { %v495_v40 = vmul.f32 %v493_v39, %v1711_v4 }
 0x1fb   : > { %v1771_v41 = vadd.f32 %v495_v40, %v486_v34  ;;  %v1310_v34 = vld [vmem:[%s1926_s2 + $0x30] sm:$0xff] }
 0x1fd   : > { %v505_v42 = vsel %vm308_vm1, %v1711_v4, %v1771_v41  ;;  %v509_v43 = vrot.slane %v1771_v41, 4 }
 0x1fe   : > { %1289 = vst [vmem:[%s1713_s18 + $0x8] sm:$0xff] %v505_v42 }
 0x1ff   : > { %v511_v44 = vsel %vm308_vm1, %v509_v43, %v1717_v6 }
 0x200   : > { %1362 = vmatprep.subr.mxu0 %v511_v44 }
 0x201   : > { %1363 = vmatpush3.msra.mxu0 %v511_v44 }
 0x202   : > { %1365 = vmatmul.mubr.msk.f32.vlgmr.msra.gmra.mrb[2].mxu0 %vm324_vm0, %v1291_v45 }
 0x203   : > { %1376 = vmatprep.mubr.msk.f32.mxu0 %vm324_vm0, %v1300_v56  ;;  %v931_v56 = vpop.permute.xlu0 %930 }
 0x2d5   : > { %v1366_v47 = vpop.f32.mrb[2].mxu0 }
 0x2d6   : > { %v606_v49 = vadd.f32 %v1366_v47, %v526_v46  ;;  %v600_v50 = vpop.f32.mrb[3].mxu0 }
 0x2d7   : > { %v601_v51 = vadd.f32 %v600_v50, %v521_v48 }
 0x2d8   : > { %1472 = vtanh.f32 %v606_v49 }
 0x2d9   : > { %1474 = vtanh.f32 %v601_v51 }
 0x2e2   : > { %v1473_v52 = vpop.eup %1472 }
 0x2e3   : > { %v1475_v53 = vpop.eup %1474 }
 0x2e4   : > { %v1402_v54 = vpack.c.bf16 %v1473_v52, %v1475_v53 }
 0x2e6   : > { %1403 = vmatpush3.bf16.msra.mxu1 %v1402_v54 }
 0x2e7   : > { %1404 = vmatprep.subr.bf16.mxu1 %v1593_v13 }
 0x2e9   : > { %1372 = vmatmul.mubr.msk.f32.vlgmr.msra.gmra.mrb[2].mxu1 %vm415_vm3, %v1296_v55  ;;  %v1311_v55 = vld [vmem:[%s1926_s2 + $0x38] sm:$0xff] }
 0x2ea   : > { %1383 = vmatprep.mubr.msk.f32.mxu1 %vm1594_vm2, %v1595_v14 }
 0x3bc   : > { %v689_v58 = vpop.f32.mrb[2].mxu1 }
 0x3bd   : > { %v690_v59 = vadd.f32 %v689_v58, %v618_v57  ;;  %v1373_v60 = vpop.f32.mrb[3].mxu1 }
 0x3bf   : > { %1476 = vtanh.f32 %v690_v59  ;;  %v698_v19 = vrot.slane %v690_v59, 4 }
 0x3c9   : > { %v1477_v0 = vpop.eup %1476 }
 0x3ca   : > { %v694_v2 = vmul.f32 1.442695, %v1477_v0  ;;  %v701_v3 = vsel %vm308_vm1, %v1477_v0, 0.0 }
 0x3cb   : > { %v702_v5 = vrot.slane %v701_v3, 4 }
 0x3cc   : > { %1478 = vpow2.f32 %v694_v2 }
 0x3cd   : > { %v703_v8 = vadd.f32 %v702_v5, %v701_v3 }
 0x3cf   : > { %v704_v9 = vrot.slane %v703_v8, 2 }
 0x3d1   : > { %v705_v10 = vadd.f32 %v704_v9, %v703_v8 }
 0x3d3   : > { %v706_v12 = vrot.slane %v705_v10, 1 }
 0x3d5   : > { %v707_v16 = vadd.f32 %v706_v12, %v705_v10 }
 0x3d6   : > { %v1479_v17 = vpop.eup %1478 }
 0x3d7   : > { %v696_v18 = vmul.f32 %v1479_v17, %v1711_v4  ;;  %v708_v20 = vadd.f32 %v707_v16, %v503_v15  ;;  %v727_v4 = vpop.permute.xlu1 %726 }
 0x3d9   : > { %v1798_v21 = vadd.f32 %v698_v19, %v696_v18 }
 0x3db   : > { %v709_v22 = vsel %vm308_vm1, %v1798_v21, %v1771_v41  ;;  %v712_v23 = vsel %vm308_vm1, %v1798_v21, %v1717_v6 }
 0x3dc   : > { %1299 = vst [vmem:[%s1713_s18 + $0x10] sm:$0xff] %v709_v22  ;;  %1374 = vmatprep.subr.mxu0 %v712_v23 }
 0x3dd   : > { %1375 = vmatpush3.msra.mxu0 %v712_v23 }
 0x3de   : > { %1377 = vmatmul.mubr.msk.f32.vlgmr.msra.gmra.mrb[4].mxu0 %vm324_vm0, %v1301_v24 }
 0x3df   : > { %1388 = vmatprep.mubr.msk.f32.mxu0 %vm324_vm0, %v1310_v34 }
 0x4b1   : > { %v1378_v25 = vpop.f32.mrb[4].mxu0 }
 0x4b2   : > { %v807_v27 = vadd.f32 %v1378_v25, %v727_v4  ;;  %v801_v28 = vpop.f32.mrb[5].mxu0 }
 0x4b3   : > { %v802_v29 = vadd.f32 %v801_v28, %v722_v26 }
 0x4b4   : > { %1480 = vtanh.f32 %v807_v27 }
 0x4b5   : > { %1482 = vtanh.f32 %v802_v29 }
 0x4be   : > { %v1481_v30 = vpop.eup %1480 }
 0x4bf   : > { %v1483_v31 = vpop.eup %1482 }
 0x4c0   : > { %v1405_v32 = vpack.c.bf16 %v1481_v30, %v1483_v31 }
 0x4c2   : > { %1406 = vmatpush3.bf16.msra.mxu1 %v1405_v32 }
 0x4c3   : > { %1407 = vmatprep.subr.bf16.mxu1 %v1593_v13 }
 0x4c5   : > { %1384 = vmatmul.mubr.msk.f32.vlgmr.msra.gmra.mrb[4].mxu1 %vm415_vm3, %v1306_v33 }
 0x4c6   : > { %1395 = vmatprep.mubr.msk.f32.mxu1 %vm1594_vm2, %v1595_v14 }
 0x598   : > { %v890_v36 = vpop.f32.mrb[4].mxu1 }
 0x599   : > { %v891_v37 = vadd.f32 %v890_v36, %v819_v35  ;;  %v1385_v38 = vpop.f32.mrb[5].mxu1 }
 0x59b   : > { %1484 = vtanh.f32 %v891_v37 }
 0x5a5   : > { %v1485_v39 = vpop.eup %1484 }
 0x5a6   : > { %v895_v40 = vmul.f32 1.442695, %v1485_v39  ;;  %v902_v13 = vsel %vm308_vm1, %v1485_v39, 0.0 }
 0x5a7   : > { %v903_v42 = vrot.slane %v902_v13, 4 }
 0x5a8   : > { %1486 = vpow2.f32 %v895_v40 }
 0x5a9   : > { %v904_v43 = vadd.f32 %v903_v42, %v902_v13 }
 0x5ab   : > { %v905_v14 = vrot.slane %v904_v43, 2 }
 0x5ad   : > { %v906_v44 = vadd.f32 %v905_v14, %v904_v43 }
 0x5af   : > { %v907_v45 = vrot.slane %v906_v44, 1 }
 0x5b1   : > { %v908_v46 = vadd.f32 %v907_v45, %v906_v44 }
 0x5b2   : > { %v1487_v47 = vpop.eup %1486 }
 0x5b3   : > { %v898_v48 = vrot.slane %v1487_v47, 4  ;;  %v909_v49 = vadd.f32 %v908_v46, %v708_v20 }
 0x5b5   : > { %v900_v50 = vmul.f32 %v898_v48, %v1771_v41  ;;  %v926_v41 = vpop.permute.xlu1 %925 }
 0x5b7   : > { %v901_v51 = vadd.f32 %v900_v50, %v891_v37 }
 0x5b9   : > { %v910_v52 = vsel %vm308_vm1, %v1798_v21, %v901_v51  ;;  %v914_v53 = vrot.slane %v901_v51, 4  ;;  %v1023_v0 = vpop.permute.xlu1 %1022  ;;  %v1125_v7 = vmul.f32 %v901_v51, %v901_v51 }
 0x5ba   : > { %1309 = vst [vmem:[%s1713_s18 + $0x18] sm:$0xff] %v910_v52 }
 0x5bb   : > { %v916_v54 = vsel %vm308_vm1, %v914_v53, %v1717_v6  ;;  %v1316_v6 = vld [vmem:[%s1928_s4 + $0x18] sm:$0xff]  ;;  %v1127_v11 = vrot.slane %v1125_v7, 4 }
 0x5bc   : > { %1386 = vmatprep.subr.mxu0 %v916_v54 }
 0x5bd   : > { %1387 = vmatpush3.msra.mxu0 %v916_v54  ;;  %v1129_v16 = vsel %vm308_vm1, %v1127_v11, 0.0 }
 0x5be   : > { %1389 = vmatmul.mubr.msk.f32.vlgmr.msra.gmra.mrb[6].mxu0 %vm324_vm0, %v1311_v55  ;;  %v1130_v19 = vrot.slane %v1129_v16, 4 }
 0x5c0   : > { %v1131_v25 = vadd.f32 %v1130_v19, %v1129_v16 }
 0x5c2   : > { %v1132_v29 = vrot.slane %v1131_v25, 2 }
 0x691   : > { %v1390_v57 = vpop.f32.mrb[6].mxu0 }
 0x692   : > { %v1011_v58 = vadd.f32 %v1390_v57, %v931_v56  ;;  %v1005_v59 = vpop.f32.mrb[7].mxu0 }
 0x693   : > { %v1006_v60 = vadd.f32 %v1005_v59, %v926_v41 }
 0x694   : > { %1488 = vtanh.f32 %v1011_v58 }
 0x695   : > { %1490 = vtanh.f32 %v1006_v60 }
 0x69e   : > { %v1489_v61 = vpop.eup %1488 }
 0x69f   : > { %v1491_v62 = vpop.eup %1490 }
 0x6a0   : > { %v1408_v63 = vpack.c.bf16 %v1489_v61, %v1491_v62 }
 0x6a2   : > { %1409 = vmatpush3.bf16.msra.mxu1 %v1408_v63 }
 0x6a5   : > { %1396 = vmatmul.mubr.msk.f32.vlgmr.msra.gmra.mrb[6].mxu1 %vm415_vm3, %v1316_v6 }
 0x778   : > { %v1094_v1 = vpop.f32.mrb[6].mxu1 }
 0x779   : > { %v1095_v2 = vadd.f32 %v1094_v1, %v1023_v0  ;;  %v1397_v3 = vpop.f32.mrb[7].mxu1 }
 0x77b   : > { %1492 = vtanh.f32 %v1095_v2  ;;  %v1103_v24 = vrot.slane %v1095_v2, 4 }
 0x785   : > { %v1493_v5 = vpop.eup %1492 }
 0x786   : > { %v1099_v8 = vmul.f32 1.442695, %v1493_v5  ;;  %v1106_v9 = vsel %vm308_vm1, %v1493_v5, 0.0 }
 0x787   : > { %v1107_v10 = vrot.slane %v1106_v9, 4 }
 0x788   : > { %1494 = vpow2.f32 %v1099_v8 }
 0x789   : > { %v1108_v12 = vadd.f32 %v1107_v10, %v1106_v9 }
 0x78b   : > { %v1109_v15 = vrot.slane %v1108_v12, 2 }
 0x78d   : > { %v1110_v17 = vadd.f32 %v1109_v15, %v1108_v12 }
 0x78f   : > { %v1111_v18 = vrot.slane %v1110_v17, 1 }
 0x791   : > { %v1112_v20 = vadd.f32 %v1111_v18, %v1110_v17 }
 0x792   : > { %v1495_v22 = vpop.eup %1494 }
 0x793   : > { %v1101_v23 = vmul.f32 %v1495_v22, %v1798_v21  ;;  %v1113_v4 = vadd.f32 %v1112_v20, %v909_v49 }
 0x795   : > { %v1105_v26 = vadd.f32 %v1103_v24, %v1101_v23 }
 0x797   : > { %v1114_v27 = vsel %vm308_vm1, %v1105_v26, %v901_v51  ;;  %v1117_v28 = vmul.f32 %v1105_v26, %v1105_v26 }
 0x798   : > { %1319 = vst [vmem:[%s1713_s18 + $0x20] sm:$0xff] %v1114_v27 }
 0x799   : > { %v1118_v21 = vsel %vm308_vm1, %v1117_v28, 0.0 }
 0x79a   : > { %1509 = shalt.err (!%p1506_p3)
}
 0x79b   : > { %s1510_s18 = scalar_lea.hbm %s1845_s15, 640  ;;  %s1514_s29 = scalar_lea.hbm %s1930_s6, 1280 }
 0x79c   : > { %p1511_p4 = scmp.ne.s32.totalorder %s1845_s15, %s1510_s18  ;;  %p1515_p9 = scmp.lt.u32.totalorder %s1845_s15, %s1930_s6 }
 0x79d   : > { %p1516_p10 = scmp.lt.u32.totalorder %s1514_s29, %s1510_s18  ;;  %p1518_p12 = scmp.lt.u32.totalorder %s1510_s18, %s1845_s15 }
 0x79e   : > { %p1512_p7 = pnand %p1511_p4, %p1679_p5 }
 0x79f   : > { %p1517_p11 = por %p1516_p10, %p1515_p9 }
 0x7a0   : > { %p1513_p8 = pneg %p1512_p7 }
 0x7a1   : > { %p1519_p13 = por %p1518_p12, %p1517_p11 }
 0x7a3   : > { %p1520_p0 = pnand %p1519_p13, %p1513_p8 }
 0x7a5   : > { %1523 = shalt.err (!%p1520_p0)
}
 0x7a6   : > { %s1597_s19 = smov 128   ;;  %s1598_s22 = smov 256   ;;  %v1119_v30 = vrot.slane %v1118_v21, 4  ;;  %v1133_v32 = vadd.f32 %v1132_v29, %v1131_v25  ;;  %vm1139_vm4 = vcmask 1040384  }
 0x7a7   : > { %s1599_s20 = smov 8   ;;  %s1283_s21 = sshll.u32 %s1690_s13, 1 }
 0x7a8   : > { %1411 = dma.vmem_to_hbm [thread:$0]  (%p1679_p5), %s1847_s8, 640, %s1845_s15, %s1143_s17, %s1597_s19, %s1598_s22, %s1599_s20   ;;  %v1120_v31 = vadd.f32 %v1119_v30, %v1118_v21  ;;  %v1134_v35 = vrot.slane %v1133_v32, 1 }
 0x7a9   : > { %s1323_s18 = sshll.u32 %s1662_s28, 5  ;;  %s293_s16 = scalar_lea.vmem [#allocation4], %s1283_s21 }
 0x7aa   : > { %v1121_v33 = vrot.slane %v1120_v31, 2  ;;  %v1135_v38 = vadd.f32 %v1134_v35, %v1133_v32  ;;  %s1176_s23 = sshll.u32 %s293_s16, 4  ;;  %s1881_s17 = scalar_lea.hbm %s1931_s7, %s1323_s18  ;;  %s1883_s23 = int_to_ptr.vmem [resolvable:$true] %s1176_s23 }
 0x7ab   : > { %s1148_s29 = scalar_lea.sflag [#allocation5], %s1690_s13  ;;  %s1524_s9 = scalar_lea.vmem %s1883_s23, 32 }
 0x7ac   : > { %v1122_v34 = vadd.f32 %v1121_v33, %v1120_v31  ;;  %p1525_p1 = scmp.ne.s32.totalorder %s1883_s23, %s1524_s9  ;;  %s1600_s28 = smov [#allocation4]  }
 0x7ad   : > { %s1528_s14 = sshll.u32 %s1600_s28, 4  ;;  %s1529_s14 = int_to_ptr.vmem [resolvable:$false] %s1528_s14 }
 0x7ae   : > { %v1123_v36 = vrot.slane %v1122_v34, 1  ;;  %p1526_p2 = pnand %p1525_p1, %p1679_p5  ;;  %s1530_s19 = scalar_lea.vmem %s1529_s14, 64 }
 0x7af   : > { %p1531_p4 = scmp.lt.s32.totalorder %s1883_s23, %s1529_s14  ;;  %p1532_p7 = scmp.lt.s32.totalorder %s1530_s19, %s1524_s9 }
 0x7b0   : > { %v1124_v37 = vadd.f32 %v1123_v36, %v1122_v34  ;;  %p1527_p3 = pneg %p1526_p2 }
 0x7b1   : > { %p1533_p8 = por %p1532_p7, %p1531_p4 }
 0x7b2   : > { %v1136_v39 = vadd.f32 %v1135_v38, %v1124_v37 }
 0x7b3   : > { %p1534_p9 = pnand %p1533_p8, %p1527_p3 }
 0x7b4   : > { %v1137_v40 = vmul.f32 -0.5, %v1136_v39 }
 0x7b6   : > { %v1320_v13 = vadd.f32 -7.351508, %v1137_v40 }
 0x7b8   : > { %v1140_v42 = vsel %vm1139_vm4, %v1320_v13, %v1113_v4 }
 0x7b9   : > { %1141 = vst [vmem:[%s293_s16] sm:$0x3] %v1140_v42 }
 0x7ba   : > { %1537 = shalt.err (!%p1534_p9)
}
 0x7bb   : > { %s1538_s13 = scalar_lea.hbm %s1881_s17, 32  ;;  %s1542_s21 = scalar_lea.hbm %s1931_s7, 64 }
 0x7bc   : > { %p1539_p10 = scmp.ne.s32.totalorder %s1881_s17, %s1538_s13  ;;  %p1543_p13 = scmp.lt.u32.totalorder %s1881_s17, %s1931_s7 }
 0x7bd   : > { %p1544_p0 = scmp.lt.u32.totalorder %s1542_s21, %s1538_s13  ;;  %p1546_p2 = scmp.lt.u32.totalorder %s1538_s13, %s1881_s17 }
 0x7be   : > { %p1540_p11 = pnand %p1539_p10, %p1679_p5 }
 0x7bf   : > { %p1545_p1 = por %p1544_p0, %p1543_p13 }
 0x7c0   : > { %p1541_p12 = pneg %p1540_p11 }
 0x7c1   : > { %p1547_p3 = por %p1546_p2, %p1545_p1 }
 0x7c3   : > { %p1548_p4 = pnand %p1547_p3, %p1541_p12 }
 0x7c5   : > { %1551 = shalt.err (!%p1548_p4)
}
 0x7c6   : > { %1412 = dma.vmem_to_hbm [thread:$0]  (%p1679_p5), %s1883_s23, 32, %s1881_s17, %s1148_s29  }
 0x7c7 PF: > { %p1422_p7 = scmp.ge.s32.totalorder %s1590_s27, 2  ;;  %s1188_s8 = sand.u32 1, %s1578_s24  }
 0x7c8   : > { %s1189_s15 = scalar_lea.sflag [#allocation3], %s1188_s8 }
 0x7c9   : > { %p1416_p8 = pnand %p1422_p7, %p1683_p6 }
 0x7cb   : > { %1569 = dma.done.wait (!%p1416_p8), %s1189_s15, 640  }
 0x7cc   : > { %1571 = vsyncadd (!%p1416_p8), %s1189_s15, 4294966656  ;;  %s1198_s9 = scalar_lea.sflag [#allocation5], %s1188_s8 }
 0x7cd   : > { %1573 = dma.done.wait (!%p1416_p8), %s1198_s9, 32  }
 0x7ce   : > { %1575 = vsyncadd (!%p1416_p8), %s1198_s9, 4294967264  ;;  %p21_p5 = scmp.ge.s32.totalorder %s1666_s30, 4   ;;  %s1934_s24 = smov %s1582_s25 }
 0x7cf   : > { %s1935_s25 = smov %s1586_s26  ;;  %s1936_s26 = smov %s1677_s10 }
 0x7d0   : > { %s1937_s27 = smov %s1666_s30  ;;  %23 = sbr.rel (!%p21_p5) target bundleno = 5 (0x5), region = 115 }
 0x7d7   :  { %1203 = vsyncpa [#allocation3], 1 }
 0x7d8   :  { %1205 = vsyncpa [#allocation3 + $0x1], 1 }
 0x7d9   :  { %1206 = vsyncpa [#allocation5], 1 }
 0x7da   :  { %1208 = vsyncpa [#allocation5 + $0x1], 1 }

</bundles_post_ra>
